<compile_context>
chip_gen: v7x
topology: tpu7x:2x2x1
jax: 0.10.0
libtpu: 0.0.40
codegen_flags: <defaults>
</compile_context>

<pallas_src>
import functools

import jax
import jax.numpy as jnp
from jax import lax
from jax.experimental import pallas as pl
from jax.experimental.pallas import tpu as pltpu

# Contract the last dim of both operands: X (m, k) . W (n, k) -> (m, n)
_NT_DIMS = (((1,), (1,)), ((), ()))


def _round_up(x, m):
    return ((x + m - 1) // m) * m


def _maybe_pad(a, shape):
    """Zero-pad to `shape`, skipping the pad entirely if already aligned."""
    if a.shape == tuple(shape):
        return a
    return jnp.pad(a, [(0, s - d) for d, s in zip(a.shape, shape)])


def _choose_tiles(M, K, N):
    """Lane/sublane-aligned tiles, biased large (<=512) per the perf review."""
    tk = min(512, _round_up(K, 128))
    Kp = _round_up(K, tk)
    tn = min(512, _round_up(N, 128))
    Np = _round_up(N, tn)
    tm = min(512, _round_up(M, 8))
    Mp = _round_up(M, tm)
    # v7x megacore: keep >= 2 blocks along one 'parallel' axis when possible.
    if (Mp // tm) * (Np // tn) == 1:
        if Np >= 256 and (Np // 2) % 128 == 0:
            tn = Np // 2
        elif Mp >= 16 and (Mp // 2) % 8 == 0:
            tm = Mp // 2
    return tm, tk, tn, Mp, Kp, Np


# ------------------------------- kernels ------------------------------------


def _gate_kernel(w_hat_ref, m_hat_ref, w_ref):
    """W = tanh(W_hat) * sigmoid(M_hat), elementwise, natural (N, K) layout."""
    w = jnp.tanh(w_hat_ref[...]) * jax.nn.sigmoid(m_hat_ref[...])
    w_ref[...] = w.astype(w_ref.dtype)


def _matmul_nt_kernel(x_ref, w_ref, o_ref):
    """Single K-block: O = X @ W.T written straight to the output tile."""
    o_ref[...] = lax.dot_general(
        x_ref[...], w_ref[...], _NT_DIMS, preferred_element_type=jnp.float32
    ).astype(o_ref.dtype)


def _matmul_nt_acc_kernel(x_ref, w_ref, o_ref, acc_ref):
    """K-reduction step of X @ W.T with an f32 VMEM accumulator."""
    k = pl.program_id(2)

    @pl.when(k == 0)
    def _():
        acc_ref[...] = jnp.zeros_like(acc_ref)

    acc_ref[...] += lax.dot_general(
        x_ref[...], w_ref[...], _NT_DIMS, preferred_element_type=jnp.float32
    )

    @pl.when(k == pl.num_programs(2) - 1)
    def _():
        o_ref[...] = acc_ref[...].astype(o_ref.dtype)


def _fused_nt_kernel(x_ref, w_hat_ref, m_hat_ref, o_ref):
    """Small-M, single K-block: gate + matmul fused; gate hides under the MXU."""
    w = jnp.tanh(w_hat_ref[...]) * jax.nn.sigmoid(m_hat_ref[...])
    o_ref[...] = lax.dot_general(
        x_ref[...], w.astype(x_ref.dtype), _NT_DIMS,
        preferred_element_type=jnp.float32,
    ).astype(o_ref.dtype)


def _fused_nt_acc_kernel(x_ref, w_hat_ref, m_hat_ref, o_ref, acc_ref):
    """Small-M, multi K-block: fused gate + K-reduction matmul."""
    k = pl.program_id(1)

    @pl.when(k == 0)
    def _():
        acc_ref[...] = jnp.zeros_like(acc_ref)

    w = jnp.tanh(w_hat_ref[...]) * jax.nn.sigmoid(m_hat_ref[...])
    acc_ref[...] += lax.dot_general(
        x_ref[...], w.astype(x_ref.dtype), _NT_DIMS,
        preferred_element_type=jnp.float32,
    )

    @pl.when(k == pl.num_programs(1) - 1)
    def _():
        o_ref[...] = acc_ref[...].astype(o_ref.dtype)


# ------------------------------- wrapper -------------------------------------


@functools.partial(jax.jit, static_argnames=("use_bf16",))
def nac_forward(x, w_hat, m_hat, *, use_bf16=True):
    """NAC_Cell.forward: X @ (tanh(W_hat) * sigmoid(M_hat)).T"""
    M, K = x.shape
    N, K2 = w_hat.shape
    assert K == K2 and m_hat.shape == (N, K)

    compute_dtype = jnp.bfloat16 if use_bf16 else x.dtype
    out_dtype = x.dtype
    tm, tk, tn, Mp, Kp, Np = _choose_tiles(M, K, N)
    num_m, num_n, num_k = Mp // tm, Np // tn, Kp // tk

    x_p = _maybe_pad(x, (Mp, Kp)).astype(compute_dtype)
    w_hat_p = _maybe_pad(w_hat, (Np, Kp))
    m_hat_p = _maybe_pad(m_hat, (Np, Kp))

    if num_m == 1:
        # ---- Small-batch path: fuse the gate into the matmul kernel. ----
        if num_k == 1:
            out_p = pl.pallas_call(
                _fused_nt_kernel,
                out_shape=jax.ShapeDtypeStruct((Mp, Np), out_dtype),
                grid_spec=pltpu.PrefetchScalarGridSpec(
                    num_scalar_prefetch=0,
                    grid=(num_n,),
                    in_specs=[
                        pl.BlockSpec((Mp, Kp), lambda j: (0, 0)),
                        pl.BlockSpec((tn, Kp), lambda j: (j, 0)),
                        pl.BlockSpec((tn, Kp), lambda j: (j, 0)),
                    ],
                    out_specs=pl.BlockSpec((Mp, tn), lambda j: (0, j)),
                ),
                compiler_params=pltpu.CompilerParams(
                    dimension_semantics=("parallel",),
                ),
            )(x_p, w_hat_p, m_hat_p)
        else:
            out_p = pl.pallas_call(
                _fused_nt_acc_kernel,
                out_shape=jax.ShapeDtypeStruct((Mp, Np), out_dtype),
                grid_spec=pltpu.PrefetchScalarGridSpec(
                    num_scalar_prefetch=0,
                    grid=(num_n, num_k),
                    in_specs=[
                        pl.BlockSpec((Mp, tk), lambda j, k: (0, k)),
                        pl.BlockSpec((tn, tk), lambda j, k: (j, k)),
                        pl.BlockSpec((tn, tk), lambda j, k: (j, k)),
                    ],
                    out_specs=pl.BlockSpec((Mp, tn), lambda j, k: (0, j)),
                    scratch_shapes=[pltpu.VMEM((Mp, tn), jnp.float32)],
                ),
                compiler_params=pltpu.CompilerParams(
                    dimension_semantics=("parallel", "arbitrary"),
                ),
            )(x_p, w_hat_p, m_hat_p)
        return out_p[:M, :N]

    # ---- Large-M path: gate once (memory-bound, big tiles), then matmul. ----
    tng = min(512, Np)
    tkg = min(512, Kp)
    w_p = pl.pallas_call(
        _gate_kernel,
        out_shape=jax.ShapeDtypeStruct((Np, Kp), compute_dtype),
        grid_spec=pltpu.PrefetchScalarGridSpec(
            num_scalar_prefetch=0,
            grid=(Np // tng, Kp // tkg),
            in_specs=[
                pl.BlockSpec((tng, tkg), lambda i, j: (i, j)),
                pl.BlockSpec((tng, tkg), lambda i, j: (i, j)),
            ],
            out_specs=pl.BlockSpec((tng, tkg), lambda i, j: (i, j)),
        ),
        compiler_params=pltpu.CompilerParams(
            dimension_semantics=("parallel", "parallel"),
        ),
    )(w_hat_p, m_hat_p)

    if num_k == 1:
        out_p = pl.pallas_call(
            _matmul_nt_kernel,
            out_shape=jax.ShapeDtypeStruct((Mp, Np), out_dtype),
            grid_spec=pltpu.PrefetchScalarGridSpec(
                num_scalar_prefetch=0,
                grid=(num_m, num_n),
                in_specs=[
                    pl.BlockSpec((tm, Kp), lambda i, j: (i, 0)),
                    pl.BlockSpec((tn, Kp), lambda i, j: (j, 0)),
                ],
                out_specs=pl.BlockSpec((tm, tn), lambda i, j: (i, j)),
            ),
            compiler_params=pltpu.CompilerParams(
                dimension_semantics=("parallel", "parallel"),
            ),
        )(x_p, w_p)
    else:
        out_p = pl.pallas_call(
            _matmul_nt_acc_kernel,
            out_shape=jax.ShapeDtypeStruct((Mp, Np), out_dtype),
            grid_spec=pltpu.PrefetchScalarGridSpec(
                num_scalar_prefetch=0,
                grid=(num_m, num_n, num_k),
                in_specs=[
                    pl.BlockSpec((tm, tk), lambda i, j, k: (i, k)),
                    pl.BlockSpec((tn, tk), lambda i, j, k: (j, k)),
                ],
                out_specs=pl.BlockSpec((tm, tn), lambda i, j, k: (i, j)),
                scratch_shapes=[pltpu.VMEM((tm, tn), jnp.float32)],
            ),
            compiler_params=pltpu.CompilerParams(
                dimension_semantics=("parallel", "parallel", "arbitrary"),
            ),
        )(x_p, w_p)

    return out_p[:M, :N]


# ------------------------------- test harness --------------------------------


def xavier_uniform(key, shape):
    # nn.init.xavier_uniform_ for a 2-D (out, in) weight.
    fan_out, fan_in = shape
    bound = (6.0 / (fan_in + fan_out)) ** 0.5
    return jax.random.uniform(key, shape, jnp.float32, -bound, bound)


def reference(x, w_hat, m_hat):
    w = jnp.tanh(w_hat) * jax.nn.sigmoid(m_hat)
    return x @ w.T


if __name__ == "__main__":
    key = jax.random.PRNGKey(0)

    cases = [
        (8, 32, 64),        # tiny / unaligned -> zero-pad, fused single-K kernel
        (512, 256, 512),    # aligned, fused single-K, 2 N-blocks (both v7x TCs)
        (256, 1024, 256),   # fused gate + K-reduction path
        (1024, 128, 256),   # two-stage: gate kernel + single-K matmul
        (1024, 1024, 256),  # two-stage: gate kernel + K-reduction matmul
    ]
    for (batch, input_dim, output_dim) in cases:
        key, k_x, k_w, k_m = jax.random.split(key, 4)
        x = jax.random.normal(k_x, (batch, input_dim), jnp.float32)
        w_hat = xavier_uniform(k_w, (output_dim, input_dim))
        m_hat = xavier_uniform(k_m, (output_dim, input_dim))

        out = jax.block_until_ready(nac_forward(x, w_hat, m_hat))
        assert out.shape == (batch, output_dim)

        # Quantization-matched reference: same bf16 rounding of the MXU operands
        # as the kernel, f32 accumulation -> tight structural check.
        w_q = (jnp.tanh(w_hat) * jax.nn.sigmoid(m_hat)).astype(jnp.bfloat16)
        x_q = x.astype(jnp.bfloat16).astype(jnp.float32)
        ref_q = jnp.matmul(x_q, w_q.astype(jnp.float32).T,
                           precision=lax.Precision.HIGHEST)
        err_q = float(jnp.max(jnp.abs(out - ref_q)))
        assert jnp.allclose(out, ref_q, atol=2e-3, rtol=2e-3), (
            f"{(batch, input_dim, output_dim)}: max abs err vs bf16 ref = {err_q}"
        )

        # Loose check vs the exact f32 PyTorch semantics (bf16 operand rounding).
        ref = reference(x, w_hat, m_hat)
        err = float(jnp.max(jnp.abs(out - ref)))
        assert jnp.allclose(out, ref, atol=6e-2, rtol=6e-2), (
            f"{(batch, input_dim, output_dim)}: max abs err vs f32 ref = {err}"
        )

    print("KERNEL_OK")
</pallas_src>

<mosaic_0001>
module attributes {stable_mosaic.version = 11 : i64} {
  func.func @_fused_nt_kernel(%arg0: i32, %arg1: memref<8x128xbf16, #tpu.memory_space<vmem>>, %arg2: memref<128x128xf32, #tpu.memory_space<vmem>>, %arg3: memref<128x128xf32, #tpu.memory_space<vmem>>, %arg4: memref<8x128xf32, #tpu.memory_space<vmem>>) attributes {dimension_semantics = [#tpu.dimension_semantics<parallel>], iteration_bounds = array<i64: 1>, scalar_prefetch = 0 : i64, scratch_operands = 0 : i64, tpu.core_type = #tpu.core_type<tc>, window_params = [{pipeline_mode = #tpu.pipeline_mode<synchronous>, transform_indices = @transform_0, window_bounds = array<i64: 8, 128>}, {transform_indices = @transform_1, window_bounds = array<i64: 128, 128>}, {transform_indices = @transform_2, window_bounds = array<i64: 128, 128>}, {transform_indices = @transform_3, window_bounds = array<i64: 8, 128>}]} {
    %c0 = arith.constant 0 : index
    %c0_0 = arith.constant 0 : index
    %0 = vector.load %arg2[%c0, %c0_0] : memref<128x128xf32, #tpu.memory_space<vmem>>, vector<128x128xf32>
    %1 = math.tanh %0 : vector<128x128xf32>
    %c0_1 = arith.constant 0 : index
    %c0_2 = arith.constant 0 : index
    %2 = vector.load %arg3[%c0_1, %c0_2] : memref<128x128xf32, #tpu.memory_space<vmem>>, vector<128x128xf32>
    %3 = arith.negf %2 : vector<128x128xf32>
    %4 = math.exp %3 : vector<128x128xf32>
    %cst = arith.constant 1.000000e+00 : f32
    %5 = vector.broadcast %cst : f32 to vector<128x128xf32>
    %6 = arith.addf %5, %4 : vector<128x128xf32>
    %7 = arith.divf %5, %6 : vector<128x128xf32>
    %8 = arith.mulf %1, %7 : vector<128x128xf32>
    %c0_3 = arith.constant 0 : index
    %c0_4 = arith.constant 0 : index
    %9 = vector.load %arg1[%c0_3, %c0_4] : memref<8x128xbf16, #tpu.memory_space<vmem>>, vector<8x128xbf16>
    %10 = arith.truncf %8 : vector<128x128xf32> to vector<128x128xbf16>
    %cst_5 = arith.constant dense<0.000000e+00> : vector<8x128xf32>
    %11 = tpu.matmul %9, %10, %cst_5 {dimension_numbers = #tpu.dot_dimension_numbers<[1], [1], [0], [0], [0, 0, 1, 0], [], []>} : vector<8x128xbf16>, vector<128x128xbf16>, vector<8x128xf32> -> vector<8x128xf32>
    %c0_6 = arith.constant 0 : index
    %c0_7 = arith.constant 0 : index
    %12 = vector.load %arg4[%c0_6, %c0_7] : memref<8x128xf32, #tpu.memory_space<vmem>>, vector<8x128xf32>
    tpu.vector_store %arg4[%c0_6, %c0_7], %11 {strides = array<i32>} : memref<8x128xf32, #tpu.memory_space<vmem>>, vector<8x128xf32>,
    return
  }
  func.func @transform_0(%arg0: i32) -> (i32, i32) {
    %c0_i32 = arith.constant 0 : i32
    %c0_i32_0 = arith.constant 0 : i32
    %c0_i32_1 = arith.constant 0 : i32
    return %c0_i32, %c0_i32_0 : i32, i32
  }
  func.func @transform_1(%arg0: i32) -> (i32, i32) {
    %c0_i32 = arith.constant 0 : i32
    %c0_i32_0 = arith.constant 0 : i32
    return %arg0, %c0_i32 : i32, i32
  }
  func.func @transform_2(%arg0: i32) -> (i32, i32) {
    %c0_i32 = arith.constant 0 : i32
    %c0_i32_0 = arith.constant 0 : i32
    return %arg0, %c0_i32 : i32, i32
  }
  func.func @transform_3(%arg0: i32) -> (i32, i32) {
    %c0_i32 = arith.constant 0 : i32
    %c0_i32_0 = arith.constant 0 : i32
    return %c0_i32, %arg0 : i32, i32
  }
}

</mosaic_0001>

<bundles_post_ra>
// kernel: nac_forward.1
= control target key start
LH: loop header
LB: loop body
LE: loop exit
PB: predicated region body
PF: predicated region fallthrough
CT: control target
= control target key end

     0   :  { %v408_v1 = vmov 0.0   ;;  %vm409_vm0 = vmmov 0   ;;  %s551_s0 = inlined_call_operand.vmem [shape: bf16[8,128], index: 0, kind: input, shape index: {}]   ;;  %s552_s1 = inlined_call_operand.vmem [shape: f32[128,128], index: 1, kind: input, shape index: {}]   ;;  %s553_s2 = inlined_call_operand.vmem [shape: f32[128,128], index: 2, kind: input, shape index: {}]   ;;  %s554_s3 = inlined_call_operand.hbm [shape: f32[8,128], index: 3, kind: output, shape index: {}]  }
   0x1   :  { %v48_v0 = vld [vmem:[%s553_s2] sm:$0xff]  ;;  %265 = vmatprep.subr.bf16.mxu0 %v408_v1  ;;  %v49_v2 = vld [vmem:[%s553_s2 + $0x8] sm:$0xff]  ;;  %281 = vmatprep.mubr.msk.bf16.mxu0 %vm409_vm0, %v408_v1  ;;  %v50_v5 = vld [vmem:[%s553_s2 + $0x10] sm:$0xff] }
   0x2   :  { %v240_v3 = vmul.f32 -1.442695, %v48_v0  ;;  %v241_v4 = vmul.f32 -1.442695, %v49_v2  ;;  %v51_v6 = vld [vmem:[%s553_s2 + $0x18] sm:$0xff]  ;;  %v52_v9 = vld [vmem:[%s553_s2 + $0x20] sm:$0xff] }
   0x3   :  { %v242_v7 = vmul.f32 -1.442695, %v50_v5  ;;  %v243_v8 = vmul.f32 -1.442695, %v51_v6  ;;  %v53_v10 = vld [vmem:[%s553_s2 + $0x28] sm:$0xff]  ;;  %v16_v11 = vld [vmem:[%s552_s1] sm:$0xff] }
   0x4   :  { %288 = vpow2.f32 %v240_v3  ;;  %v244_v12 = vmul.f32 -1.442695, %v52_v9  ;;  %v245_v13 = vmul.f32 -1.442695, %v53_v10  ;;  %v54_v14 = vld [vmem:[%s553_s2 + $0x30] sm:$0xff]  ;;  %v17_v15 = vld [vmem:[%s552_s1 + $0x8] sm:$0xff] }
   0x5   :  { %290 = vpow2.f32 %v241_v4  ;;  %v18_v16 = vld [vmem:[%s552_s1 + $0x10] sm:$0xff]  ;;  %v55_v17 = vld [vmem:[%s553_s2 + $0x38] sm:$0xff]  ;;  %v246_v18 = vmul.f32 -1.442695, %v54_v14 }
   0x6   :  { %292 = vpow2.f32 %v242_v7 }
   0x7   :  { %294 = vpow2.f32 %v243_v8 }
   0x8   :  { %296 = vtanh.f32 %v16_v11 }
   0x9   :  { %298 = vpow2.f32 %v244_v12 }
   0xa   :  { %300 = vpow2.f32 %v245_v13 }
   0xb   :  { %8 = vsyncpa [#allocation3], 0  ;;  %302 = vtanh.f32 %v17_v15  ;;  %v247_v22 = vmul.f32 -1.442695, %v55_v17  ;;  %v19_v24 = vld [vmem:[%s552_s1 + $0x18] sm:$0xff]  ;;  %v56_v26 = vld [vmem:[%s553_s2 + $0x40] sm:$0xff] }
   0xc   :  { %304 = vtanh.f32 %v18_v16  ;;  %v20_v30 = vld [vmem:[%s552_s1 + $0x20] sm:$0xff]  ;;  %v57_v31 = vld [vmem:[%s553_s2 + $0x48] sm:$0xff]  ;;  %v248_v34 = vmul.f32 -1.442695, %v56_v26  ;;  %v58_v44 = vld [vmem:[%s553_s2 + $0x50] sm:$0xff]  ;;  %s410_s22 = smov [#allocation2]  }
   0xd   :  { %306 = vpow2.f32 %v246_v18  ;;  %v21_v33 = vld [vmem:[%s552_s1 + $0x28] sm:$0xff]  ;;  %v249_v38 = vmul.f32 -1.442695, %v57_v31  ;;  %v22_v47 = vld [vmem:[%s552_s1 + $0x30] sm:$0xff]  ;;  %v59_v48 = vld [vmem:[%s553_s2 + $0x58] sm:$0xff]  ;;  %s232_s23 = sshll.u32 %s410_s22, 4  ;;  %s233_s23 = int_to_ptr.vmem [resolvable:$true] %s232_s23 }
   0xe   :  { %v289_v19 = vpop.eup %288  ;;  %v23_v51 = vld [vmem:[%s552_s1 + $0x38] sm:$0xff]  ;;  %v250_v54 = vmul.f32 -1.442695, %v58_v44  ;;  %v251_v57 = vmul.f32 -1.442695, %v59_v48  ;;  %v60_v0 = vld [vmem:[%s553_s2 + $0x60] sm:$0xff]  ;;  %p389_p1 = scmp.lt.s32.totalorder %s233_s23, %s233_s23 }
   0xf   :  { %v291_v20 = vpop.eup %290  ;;  %v112_v21 = vadd.f32 1.0, %v289_v19  ;;  %v24_v4 = vld [vmem:[%s552_s1 + $0x40] sm:$0xff]  ;;  %v61_v5 = vld [vmem:[%s553_s2 + $0x68] sm:$0xff]  ;;  %v252_v9 = vmul.f32 -1.442695, %v60_v0  ;;  %v62_v18 = vld [vmem:[%s553_s2 + $0x70] sm:$0xff] }
  0x10   :  { %v113_v23 = vadd.f32 1.0, %v291_v20  ;;  %v293_v25 = vpop.eup %292  ;;  %v25_v8 = vld [vmem:[%s552_s1 + $0x48] sm:$0xff]  ;;  %v253_v12 = vmul.f32 -1.442695, %v61_v5  ;;  %v63_v20 = vld [vmem:[%s553_s2 + $0x78] sm:$0xff]  ;;  %s384_s24 = scalar_lea.vmem %s233_s23, 128 }
  0x11   :  { %308 = vrcp.f32 %v112_v21  ;;  %v295_v27 = vpop.eup %294  ;;  %v114_v28 = vadd.f32 1.0, %v293_v25  ;;  %v27_v25 = vld [vmem:[%s552_s1 + $0x58] sm:$0xff]  ;;  %v254_v26 = vmul.f32 -1.442695, %v62_v18  ;;  %p385_p0 = scmp.ne.s32.totalorder %s233_s23, %s384_s24  ;;  %p390_p2 = scmp.lt.s32.totalorder %s384_s24, %s384_s24 }
  0x12   :  { %310 = vrcp.f32 %v113_v23  ;;  %v115_v29 = vadd.f32 1.0, %v295_v27  ;;  %v297_v32 = vpop.eup %296 }
  0x13   :  { %312 = vpow2.f32 %v247_v22  ;;  %v299_v35 = vpop.eup %298  ;;  %v26_v22 = vld [vmem:[%s552_s1 + $0x50] sm:$0xff]  ;;  %p391_p3 = por %p390_p2, %p389_p1 }
  0x14   :  { %314 = vtanh.f32 %v19_v24  ;;  %v301_v36 = vpop.eup %300  ;;  %v116_v37 = vadd.f32 1.0, %v299_v35 }
  0x15   :  { %316 = vrcp.f32 %v114_v28  ;;  %v303_v39 = vpop.eup %302  ;;  %v117_v40 = vadd.f32 1.0, %v301_v36  ;;  %v255_v28 = vmul.f32 -1.442695, %v63_v20  ;;  %p392_p4 = pnand %p391_p3, %p385_p0 }
  0x16   :  { %318 = vrcp.f32 %v115_v29  ;;  %v305_v41 = vpop.eup %304 }
  0x17   :  { %320 = vtanh.f32 %v20_v30  ;;  %v307_v42 = vpop.eup %306 }
  0x18   :  { %322 = vtanh.f32 %v21_v33  ;;  %v118_v52 = vadd.f32 1.0, %v307_v42 }
  0x19   :  { %324 = vpow2.f32 %v248_v34 }
  0x1a   :  { %326 = vrcp.f32 %v116_v37 }
  0x1b   :  { %v309_v43 = vpop.eup %308  ;;  %328 = vpow2.f32 %v249_v38 }
  0x1c   :  { %v311_v45 = vpop.eup %310  ;;  %v160_v46 = vmul.f32 %v309_v43, %v297_v32  ;;  %330 = vrcp.f32 %v117_v40  ;;  %v28_v40 = vld [vmem:[%s552_s1 + $0x60] sm:$0xff] }
  0x1d   :  { %v313_v49 = vpop.eup %312  ;;  %v161_v50 = vmul.f32 %v311_v45, %v303_v39  ;;  %332 = vtanh.f32 %v22_v47 }
  0x1e   :  { %v315_v53 = vpop.eup %314  ;;  %334 = vtanh.f32 %v23_v51  ;;  %v119_v59 = vadd.f32 1.0, %v313_v49 }
  0x1f   :  { %v317_v55 = vpop.eup %316  ;;  %v177_v56 = vpack.c.bf16 %v161_v50, %v160_v46  ;;  %336 = vrcp.f32 %v118_v52 }
  0x20   :  { %v319_v58 = vpop.eup %318  ;;  %v162_v61 = vmul.f32 %v317_v55, %v305_v41  ;;  %338 = vpow2.f32 %v250_v54  ;;  %v29_v41 = vld [vmem:[%s552_s1 + $0x68] sm:$0xff]  ;;  %v31_v54 = vld [vmem:[%s552_s1 + $0x78] sm:$0xff] }
  0x21   :  { %v321_v60 = vpop.eup %320  ;;  %266 = vmatpush3.bf16.xpose.msra.mxu0 %v177_v56  ;;  %v163_v62 = vmul.f32 %v319_v58, %v315_v53  ;;  %340 = vpow2.f32 %v251_v57  ;;  %v30_v53 = vld [vmem:[%s552_s1 + $0x70] sm:$0xff] }
  0x22   :  { %v323_v63 = vpop.eup %322  ;;  %267 = vmatprep.subr.bf16.mxu0 %v408_v1  ;;  %342 = vrcp.f32 %v119_v59 }
  0x23   :  { %v325_v2 = vpop.eup %324  ;;  %v178_v7 = vpack.c.bf16 %v163_v62, %v162_v61  ;;  %344 = vtanh.f32 %v24_v4 }
  0x24   :  { %v327_v3 = vpop.eup %326  ;;  %v120_v11 = vadd.f32 1.0, %v325_v2  ;;  %346 = vtanh.f32 %v25_v8 }
  0x25   :  { %v329_v6 = vpop.eup %328  ;;  %v164_v15 = vmul.f32 %v327_v3, %v321_v60  ;;  %348 = vpow2.f32 %v252_v9 }
  0x26   :  { %v331_v10 = vpop.eup %330  ;;  %v121_v13 = vadd.f32 1.0, %v329_v6  ;;  %350 = vrcp.f32 %v120_v11  ;;  %v176_v11 = vld [vmem:[%s551_s0] sm:$0xf] }
  0x27   :  { %v333_v14 = vpop.eup %332  ;;  %v165_v16 = vmul.f32 %v331_v10, %v323_v63  ;;  %352 = vpow2.f32 %v253_v12 }
  0x28   :  { %v335_v17 = vpop.eup %334  ;;  %354 = vrcp.f32 %v121_v13 }
  0x29   :  { %268 = vmatpush3.bf16.xpose.msra.mxu0 %v178_v7  ;;  %v337_v19 = vpop.eup %336  ;;  %v179_v24 = vpack.c.bf16 %v165_v16, %v164_v15  ;;  %356 = vtanh.f32 %v26_v22 }
  0x2a   :  { %269 = vmatprep.subr.bf16.mxu0 %v408_v1  ;;  %v339_v21 = vpop.eup %338  ;;  %358 = vtanh.f32 %v27_v25  ;;  %v166_v32 = vmul.f32 %v337_v19, %v333_v14 }
  0x2b   :  { %v341_v23 = vpop.eup %340  ;;  %v122_v29 = vadd.f32 1.0, %v339_v21  ;;  %360 = vpow2.f32 %v254_v26 }
  0x2c   :  { %v343_v27 = vpop.eup %342  ;;  %v123_v30 = vadd.f32 1.0, %v341_v23  ;;  %362 = vpow2.f32 %v255_v28 }
  0x2d   :  { %v345_v31 = vpop.eup %344  ;;  %v167_v33 = vmul.f32 %v343_v27, %v335_v17  ;;  %364 = vrcp.f32 %v122_v29 }
  0x2e   :  { %v347_v34 = vpop.eup %346  ;;  %366 = vrcp.f32 %v123_v30 }
  0x2f   :  { %v349_v35 = vpop.eup %348  ;;  %v180_v38 = vpack.c.bf16 %v167_v33, %v166_v32  ;;  %368 = vtanh.f32 %v28_v40 }
  0x30   :  { %v351_v36 = vpop.eup %350  ;;  %v124_v42 = vadd.f32 1.0, %v349_v35  ;;  %370 = vtanh.f32 %v29_v41 }
  0x31   :  { %270 = vmatpush3.bf16.xpose.msra.mxu0 %v179_v24  ;;  %v353_v37 = vpop.eup %352  ;;  %v168_v45 = vmul.f32 %v351_v36, %v345_v31 }
  0x32   :  { %271 = vmatprep.subr.bf16.mxu0 %v408_v1  ;;  %v355_v39 = vpop.eup %354  ;;  %v125_v43 = vadd.f32 1.0, %v353_v37  ;;  %372 = vrcp.f32 %v124_v42 }
  0x33   :  { %v357_v44 = vpop.eup %356  ;;  %v169_v46 = vmul.f32 %v355_v39, %v347_v34 }
  0x34   :  { %v359_v47 = vpop.eup %358  ;;  %374 = vrcp.f32 %v125_v43 }
  0x35   :  { %v361_v48 = vpop.eup %360  ;;  %v181_v51 = vpack.c.bf16 %v169_v46, %v168_v45  ;;  %376 = vtanh.f32 %v30_v53 }
  0x36   :  { %v363_v49 = vpop.eup %362  ;;  %v126_v55 = vadd.f32 1.0, %v361_v48  ;;  %378 = vtanh.f32 %v31_v54 }
  0x37   :  { %v365_v50 = vpop.eup %364  ;;  %v127_v56 = vadd.f32 1.0, %v363_v49 }
  0x38   :  { %v367_v52 = vpop.eup %366  ;;  %v170_v57 = vmul.f32 %v365_v50, %v357_v44  ;;  %380 = vrcp.f32 %v126_v55 }
  0x39   :  { %272 = vmatpush3.bf16.xpose.msra.mxu0 %v180_v38  ;;  %v171_v58 = vmul.f32 %v367_v52, %v359_v47  ;;  %v369_v59 = vpop.eup %368  ;;  %382 = vrcp.f32 %v127_v56 }
  0x3a   :  { %273 = vmatprep.subr.bf16.mxu0 %v408_v1  ;;  %v371_v60 = vpop.eup %370 }
  0x3b   :  { %v182_v62 = vpack.c.bf16 %v171_v58, %v170_v57 }
  0x3c   :  { %v373_v61 = vpop.eup %372 }
  0x3d   :  { %v172_v0 = vmul.f32 %v373_v61, %v369_v59 }
  0x3e   :  { %v375_v63 = vpop.eup %374 }
  0x3f   :  { %v173_v2 = vmul.f32 %v375_v63, %v371_v60  ;;  %v377_v3 = vpop.eup %376 }
  0x40   :  { %v379_v4 = vpop.eup %378 }
  0x41   :  { %274 = vmatpush3.bf16.xpose.msra.mxu0 %v181_v51  ;;  %v183_v6 = vpack.c.bf16 %v173_v2, %v172_v0 }
  0x42   :  { %275 = vmatprep.subr.bf16.mxu0 %v408_v1  ;;  %v381_v5 = vpop.eup %380 }
  0x43   :  { %v383_v7 = vpop.eup %382  ;;  %v174_v8 = vmul.f32 %v381_v5, %v377_v3 }
  0x44   :  { %v175_v9 = vmul.f32 %v383_v7, %v379_v4 }
  0x46   :  { %v184_v10 = vpack.c.bf16 %v175_v9, %v174_v8 }
  0x49   :  { %276 = vmatpush3.bf16.xpose.msra.mxu0 %v182_v62 }
  0x4a   :  { %277 = vmatprep.subr.bf16.mxu0 %v408_v1 }
  0x51   :  { %278 = vmatpush3.bf16.xpose.msra.mxu0 %v183_v6 }
  0x52   :  { %279 = vmatprep.subr.bf16.mxu0 %v408_v1 }
  0x59   :  { %280 = vmatpush3.bf16.xpose.msra.mxu0 %v184_v10 }
  0x60   :  { %282 = vmatmul.mubr.bf16.vlgmr.msra.gmra.mrb[0].mxu0 %v176_v11 }
 0x133   :  { %v219_v12 = vpop.f32.mrb[0].mxu0 }
 0x134   :  { %225 = vst [vmem:[#allocation2] sm:$0xff] %v219_v12  ;;  %v283_v13 = vpop.f32.mrb[1].mxu0 }
 0x135   :  { %v222_v14 = vpop.f32.mrb[2].mxu0 }
 0x136   :  { %395 = shalt.err (!%p392_p4)
}
 0x137   :  { %s396_s27 = scalar_lea.hbm %s554_s3, 128 }
 0x138   :  { %p397_p5 = scmp.ne.s32.totalorder %s554_s3, %s396_s27  ;;  %p400_p6 = scmp.lt.u32.totalorder %s396_s27, %s554_s3 }
 0x13a   :  { %p402_p7 = pnand %p400_p6, %p397_p5 }
 0x13c   :  { %405 = shalt.err (!%p402_p7)
}
 0x13d   :  { %235 = dma.vmem_to_hbm [thread:$0]  %s233_s23, 128, %s554_s3, [#allocation3]   ;;  %v284_v1 = vpop.f32.mrb[3].mxu0 }
 0x13e   :  { %406 = dma.done.wait [#allocation3], 128  }
 0x13f   :  { %407 = vsyncadd [#allocation3], 4294967168 }
 0x140   :  { %239 = vsyncpa [#allocation3], 1 }

</bundles_post_ra>
